<compile_context>
chip_gen: v5e
topology: v5e:2x2
jax: 0.10.0
libtpu: 0.0.40
codegen_flags: <defaults>
</compile_context>

<pallas_src>
import math

import jax
import jax.numpy as jnp
from jax.experimental import pallas as pl
from jax.experimental.pallas import tpu as pltpu


# ---------------------------------------------------------------------------
# Kernels
# ---------------------------------------------------------------------------
def _ffn_mask_kernel(x_ref, w1_ref, b1_ref, w2_ref, b2_ref, maskb_ref, out_ref):
    # Two MXU matmuls (bf16 operands, f32 accumulation), bias + ReLU on VPU,
    # action masking as a single f32 add (0 / -inf additive bias).
    x = x_ref[...]
    h = jnp.dot(x, w1_ref[...], preferred_element_type=jnp.float32) + b1_ref[...]
    h = jnp.maximum(h, 0.0).astype(w2_ref.dtype)
    a = jnp.dot(h, w2_ref[...], preferred_element_type=jnp.float32) + b2_ref[...]
    out_ref[...] = (a + maskb_ref[...]).astype(out_ref.dtype)


def _ffn_kernel(x_ref, w1_ref, b1_ref, w2_ref, b2_ref, out_ref):
    # mask=None variant: no mask stream at all (saves a B*Dout*4 B HBM stream).
    x = x_ref[...]
    h = jnp.dot(x, w1_ref[...], preferred_element_type=jnp.float32) + b1_ref[...]
    h = jnp.maximum(h, 0.0).astype(w2_ref.dtype)
    a = jnp.dot(h, w2_ref[...], preferred_element_type=jnp.float32) + b2_ref[...]
    out_ref[...] = a.astype(out_ref.dtype)


# ---------------------------------------------------------------------------
# Wrapper
# ---------------------------------------------------------------------------
def _round_up(n, m):
    return ((n + m - 1) // m) * m


def _pad2d(a, rows, cols):
    pr, pc = rows - a.shape[0], cols - a.shape[1]
    if pr == 0 and pc == 0:
        return a
    return jnp.pad(a, ((0, pr), (0, pc)))


def feed_forward(x, w1, b1, w2, b2, mask=None, *, block_b=256,
                 compute_dtype=jnp.bfloat16):
    """Pallas-backed FeedForward.forward(x, mask).

    x:    (B, Din)   float32
    w1:   (Din, H)   float32   (x @ w1 == PyTorch x @ W1.T, W1 = (H, Din))
    b1:   (1, H)     float32
    w2:   (H, Dout)  float32
    b2:   (1, Dout)  float32
    mask: (B, Dout)  int/bool or None  (0 => action disabled -> -inf)
    """
    B, Din = x.shape
    H = w1.shape[1]
    Dout = w2.shape[1]
    if b1.ndim == 1:
        b1 = b1[None, :]
    if b2.ndim == 1:
        b2 = b2[None, :]

    if mask is not None:
        if mask.ndim == 1:
            mask = mask[None, :]
        if mask.shape[0] != B:
            raise Exception("actions and mask batches have different sizes.")

    # Lane-dense padding: feature dims -> multiple of 128; batch -> multiple of
    # the (sublane-aligned) batch tile.
    LANE = 128
    Dinp = _round_up(Din, LANE)
    Hp = _round_up(H, LANE)
    Doutp = _round_up(Dout, LANE)
    TB = min(block_b, _round_up(B, 8))
    Bp = _round_up(B, TB)
    grid = (Bp // TB,)

    # bf16 operands for the MXU (zero padding is exact in bf16).
    xp = _pad2d(x, Bp, Dinp).astype(compute_dtype)
    w1p = _pad2d(w1, Dinp, Hp).astype(compute_dtype)
    w2p = _pad2d(w2, Hp, Doutp).astype(compute_dtype)
    b1p = _pad2d(b1.astype(jnp.float32), 1, Hp)
    b2p = _pad2d(b2.astype(jnp.float32), 1, Doutp)

    def batch_tiled(shape):
        return pl.BlockSpec(shape, lambda i: (i, 0))

    def resident(shape):
        return pl.BlockSpec(shape, lambda i: (0, 0))

    in_specs = [
        batch_tiled((TB, Dinp)),     # x
        resident((Dinp, Hp)),        # w1 (VMEM-resident across grid steps)
        resident((1, Hp)),           # b1
        resident((Hp, Doutp)),       # w2
        resident((1, Doutp)),        # b2
    ]
    operands = [xp, w1p, b1p, w2p, b2p]
    kernel = _ffn_kernel

    if mask is not None:
        # Additive mask bias: 0.0 where allowed, -inf where forbidden. Padded
        # columns/rows stay 0.0 and are sliced away below, so no -inf leaks.
        maskb = jnp.where(mask == 0, -jnp.inf, 0.0).astype(jnp.float32)
        maskb = _pad2d(maskb, Bp, Doutp)
        in_specs.append(batch_tiled((TB, Doutp)))
        operands.append(maskb)
        kernel = _ffn_mask_kernel

    itemsize = jnp.dtype(compute_dtype).itemsize
    bytes_accessed = (
        xp.size * itemsize + w1p.size * itemsize + w2p.size * itemsize
        + b1p.size * 4 + b2p.size * 4 + Bp * Doutp * 4
        + (Bp * Doutp * 4 if mask is not None else 0)
    )
    cost = pl.CostEstimate(
        flops=2 * Bp * (Dinp * Hp + Hp * Doutp),
        transcendentals=0,
        bytes_accessed=bytes_accessed,
    )

    # VMEM budget: resident weights/biases + double-buffered x/mask/out tiles
    # + the (TB, Hp) f32 intermediate. 2x headroom, capped at 64 MiB so the
    # same config is valid on v7x's smaller physical VMEM.
    vmem_needed = (
        (Dinp * Hp + Hp * Doutp) * itemsize + (Hp + Doutp) * 4
        + 2 * TB * Dinp * itemsize
        + 2 * TB * Doutp * 4 * (2 if mask is not None else 1)
        + TB * Hp * 4
    )
    vmem_limit = int(min(max(32 * 1024 * 1024, 2 * vmem_needed),
                         64 * 1024 * 1024))

    out = pl.pallas_call(
        kernel,
        out_shape=jax.ShapeDtypeStruct((Bp, Doutp), jnp.float32),
        grid=grid,
        in_specs=in_specs,
        out_specs=batch_tiled((TB, Doutp)),
        compiler_params=pltpu.CompilerParams(
            dimension_semantics=("parallel",),   # shards batch over v7x's 2 TCs
            vmem_limit_bytes=vmem_limit,
        ),
        cost_estimate=cost,
    )(*operands)

    return out[:B, :Dout]

    # TODO(synk): for production hidden dims, add a reduction grid axis over H
    # (f32 accumulator scratch, pl.when init/finalize) so w2 and the (TB, H)
    # intermediate need not co-reside in VMEM.


def init_params(key, din, hidden, dout):
    """Deterministic init mimicking nn.Linear's Kaiming-uniform defaults."""
    k1, k2, k3, k4 = jax.random.split(key, 4)
    bound1 = 1.0 / math.sqrt(din)
    bound2 = 1.0 / math.sqrt(hidden)
    w1 = jax.random.uniform(k1, (din, hidden), jnp.float32, -bound1, bound1)
    b1 = jax.random.uniform(k2, (1, hidden), jnp.float32, -bound1, bound1)
    w2 = jax.random.uniform(k3, (hidden, dout), jnp.float32, -bound2, bound2)
    b2 = jax.random.uniform(k4, (1, dout), jnp.float32, -bound2, bound2)
    return w1, b1, w2, b2


if __name__ == "__main__":
    key = jax.random.PRNGKey(0)
    kx, kp, km = jax.random.split(key, 3)

    B, Din, H, Dout = 8, 32, 64, 16
    x = jax.random.normal(kx, (B, Din), dtype=jnp.float32)
    w1, b1, w2, b2 = init_params(kp, Din, H, Dout)
    # Deterministic 0/1 action mask (0 => action forbidden -> -inf).
    mask = (jax.random.uniform(km, (B, Dout)) > 0.3).astype(jnp.int32)

    actions = jax.block_until_ready(feed_forward(x, w1, b1, w2, b2, mask))

    # Reference with matching bf16 operand rounding and f32 accumulation.
    xb, w1b, w2b = (t.astype(jnp.bfloat16) for t in (x, w1, w2))
    h_ref = jnp.maximum(
        jnp.dot(xb, w1b, preferred_element_type=jnp.float32) + b1, 0.0)
    a_ref = jnp.dot(h_ref.astype(jnp.bfloat16), w2b,
                    preferred_element_type=jnp.float32) + b2
    ref = jnp.where(mask == 0, -jnp.inf, a_ref)

    assert actions.shape == (B, Dout)
    assert bool(jnp.all(jnp.where(mask == 0, actions == -jnp.inf, True)))
    finite = mask != 0
    assert bool(jnp.allclose(jnp.where(finite, actions, 0.0),
                             jnp.where(finite, ref, 0.0),
                             atol=1e-3, rtol=1e-3))

    # mask=None path (no mask HBM stream).
    actions_nm = jax.block_until_ready(feed_forward(x, w1, b1, w2, b2))
    assert bool(jnp.allclose(actions_nm, a_ref, atol=1e-3, rtol=1e-3))

    print("KERNEL_OK")
</pallas_src>

<mosaic_0001>
module attributes {stable_mosaic.version = 11 : i64} {
  func.func @_ffn_mask_kernel(%arg0: i32, %arg1: memref<8x128xbf16, #tpu.memory_space<vmem>>, %arg2: memref<128x128xbf16, #tpu.memory_space<vmem>>, %arg3: memref<1x128xf32, #tpu.memory_space<vmem>>, %arg4: memref<128x128xbf16, #tpu.memory_space<vmem>>, %arg5: memref<1x128xf32, #tpu.memory_space<vmem>>, %arg6: memref<8x128xf32, #tpu.memory_space<vmem>>, %arg7: memref<8x128xf32, #tpu.memory_space<vmem>>) attributes {dimension_semantics = [#tpu.dimension_semantics<parallel>], iteration_bounds = array<i64: 1>, scalar_prefetch = 0 : i64, scratch_operands = 0 : i64, tpu.core_type = #tpu.core_type<tc>, window_params = [{transform_indices = @transform_0, window_bounds = array<i64: 8, 128>}, {pipeline_mode = #tpu.pipeline_mode<synchronous>, transform_indices = @transform_1, window_bounds = array<i64: 128, 128>}, {pipeline_mode = #tpu.pipeline_mode<synchronous>, transform_indices = @transform_2, window_bounds = array<i64: 1, 128>}, {pipeline_mode = #tpu.pipeline_mode<synchronous>, transform_indices = @transform_3, window_bounds = array<i64: 128, 128>}, {pipeline_mode = #tpu.pipeline_mode<synchronous>, transform_indices = @transform_4, window_bounds = array<i64: 1, 128>}, {transform_indices = @transform_5, window_bounds = array<i64: 8, 128>}, {transform_indices = @transform_6, window_bounds = array<i64: 8, 128>}]} {
    %c0 = arith.constant 0 : index
    %c0_0 = arith.constant 0 : index
    %0 = vector.load %arg1[%c0, %c0_0] : memref<8x128xbf16, #tpu.memory_space<vmem>>, vector<8x128xbf16>
    %c0_1 = arith.constant 0 : index
    %c0_2 = arith.constant 0 : index
    %1 = vector.load %arg2[%c0_1, %c0_2] : memref<128x128xbf16, #tpu.memory_space<vmem>>, vector<128x128xbf16>
    %cst = arith.constant dense<0.000000e+00> : vector<8x128xf32>
    %2 = tpu.matmul %0, %1, %cst {dimension_numbers = #tpu.dot_dimension_numbers<[1], [0], [0], [1], [0, 0, 1, 1], [], []>} : vector<8x128xbf16>, vector<128x128xbf16>, vector<8x128xf32> -> vector<8x128xf32>
    %c0_3 = arith.constant 0 : index
    %c0_4 = arith.constant 0 : index
    %3 = vector.load %arg3[%c0_3, %c0_4] : memref<1x128xf32, #tpu.memory_space<vmem>>, vector<1x128xf32>
    %4 = vector.broadcast %3 : vector<1x128xf32> to vector<8x128xf32>
    %5 = arith.addf %2, %4 : vector<8x128xf32>
    %cst_5 = arith.constant 0.000000e+00 : f32
    %6 = vector.broadcast %cst_5 : f32 to vector<8x128xf32>
    %7 = arith.maximumf %5, %6 : vector<8x128xf32>
    %8 = arith.truncf %7 : vector<8x128xf32> to vector<8x128xbf16>
    %c0_6 = arith.constant 0 : index
    %c0_7 = arith.constant 0 : index
    %9 = vector.load %arg4[%c0_6, %c0_7] : memref<128x128xbf16, #tpu.memory_space<vmem>>, vector<128x128xbf16>
    %cst_8 = arith.constant dense<0.000000e+00> : vector<8x128xf32>
    %10 = tpu.matmul %8, %9, %cst_8 {dimension_numbers = #tpu.dot_dimension_numbers<[1], [0], [0], [1], [0, 0, 1, 1], [], []>} : vector<8x128xbf16>, vector<128x128xbf16>, vector<8x128xf32> -> vector<8x128xf32>
    %c0_9 = arith.constant 0 : index
    %c0_10 = arith.constant 0 : index
    %11 = vector.load %arg5[%c0_9, %c0_10] : memref<1x128xf32, #tpu.memory_space<vmem>>, vector<1x128xf32>
    %12 = vector.broadcast %11 : vector<1x128xf32> to vector<8x128xf32>
    %13 = arith.addf %10, %12 : vector<8x128xf32>
    %c0_11 = arith.constant 0 : index
    %c0_12 = arith.constant 0 : index
    %14 = vector.load %arg6[%c0_11, %c0_12] : memref<8x128xf32, #tpu.memory_space<vmem>>, vector<8x128xf32>
    %15 = arith.addf %13, %14 : vector<8x128xf32>
    %c0_13 = arith.constant 0 : index
    %c0_14 = arith.constant 0 : index
    %16 = vector.load %arg7[%c0_13, %c0_14] : memref<8x128xf32, #tpu.memory_space<vmem>>, vector<8x128xf32>
    tpu.vector_store %arg7[%c0_13, %c0_14], %15 {strides = array<i32>} : memref<8x128xf32, #tpu.memory_space<vmem>>, vector<8x128xf32>,
    return
  }
  func.func @transform_0(%arg0: i32) -> (i32, i32) {
    %c0_i32 = arith.constant 0 : i32
    %c0_i32_0 = arith.constant 0 : i32
    return %arg0, %c0_i32 : i32, i32
  }
  func.func @transform_1(%arg0: i32) -> (i32, i32) {
    %c0_i32 = arith.constant 0 : i32
    %c0_i32_0 = arith.constant 0 : i32
    %c0_i32_1 = arith.constant 0 : i32
    return %c0_i32, %c0_i32_0 : i32, i32
  }
  func.func @transform_2(%arg0: i32) -> (i32, i32) {
    %c0_i32 = arith.constant 0 : i32
    %c0_i32_0 = arith.constant 0 : i32
    %c0_i32_1 = arith.constant 0 : i32
    return %c0_i32, %c0_i32_0 : i32, i32
  }
  func.func @transform_3(%arg0: i32) -> (i32, i32) {
    %c0_i32 = arith.constant 0 : i32
    %c0_i32_0 = arith.constant 0 : i32
    %c0_i32_1 = arith.constant 0 : i32
    return %c0_i32, %c0_i32_0 : i32, i32
  }
  func.func @transform_4(%arg0: i32) -> (i32, i32) {
    %c0_i32 = arith.constant 0 : i32
    %c0_i32_0 = arith.constant 0 : i32
    %c0_i32_1 = arith.constant 0 : i32
    return %c0_i32, %c0_i32_0 : i32, i32
  }
  func.func @transform_5(%arg0: i32) -> (i32, i32) {
    %c0_i32 = arith.constant 0 : i32
    %c0_i32_0 = arith.constant 0 : i32
    return %arg0, %c0_i32 : i32, i32
  }
  func.func @transform_6(%arg0: i32) -> (i32, i32) {
    %c0_i32 = arith.constant 0 : i32
    %c0_i32_0 = arith.constant 0 : i32
    return %arg0, %c0_i32 : i32, i32
  }
}

</mosaic_0001>

<bundles_post_ra>
// kernel: tpu_custom_call.1
= control target key start
LH: loop header
LB: loop body
LE: loop exit
PB: predicated region body
PF: predicated region fallthrough
CT: control target
= control target key end

     0   :  { %11 = vsyncpa [#allocation3], 0  ;;  %s550_s0 = inlined_call_operand.hbm [shape: bf16[8,128], index: 0, kind: input, shape index: {}]   ;;  %s551_s1 = inlined_call_operand.hbm [shape: bf16[128,128], index: 1, kind: input, shape index: {}]   ;;  %s552_s2 = inlined_call_operand.vmem [shape: f32[1,128], index: 2, kind: input, shape index: {}]   ;;  %s553_s3 = inlined_call_operand.hbm [shape: bf16[128,128], index: 3, kind: input, shape index: {}]   ;;  %s554_s4 = inlined_call_operand.vmem [shape: f32[1,128], index: 4, kind: input, shape index: {}]   ;;  %s555_s5 = inlined_call_operand.hbm [shape: f32[8,128], index: 5, kind: input, shape index: {}]   ;;  %s556_s6 = inlined_call_operand.hbm [shape: f32[8,128], index: 6, kind: output, shape index: {}]  }
   0x1   :  { %12 = vsyncpa [#allocation6], 0 }
   0x2   :  { %13 = vsyncpa [#allocation9], 0  ;;  %s30_s23 = sshll.u32 %s551_s1, 4  ;;  %s31_s23 = int_to_ptr.hbm [resolvable:$true] %s30_s23 }
   0x3   :  { %14 = vsyncpa [#allocation4], 0  ;;  %s487_s24 = smov [#allocation5]   ;;  %s20_s28 = sshll.u32 %s550_s0, 4  ;;  %s21_s28 = int_to_ptr.hbm [resolvable:$true] %s20_s28 }
   0x4   :  { %s32_s25 = sshll.u32 %s487_s24, 4  ;;  %s488_s29 = smov 64   ;;  %s33_s25 = int_to_ptr.vmem [resolvable:$true] %s32_s25 }
   0x5   :  { %s489_s30 = smov 4   ;;  %s490_s7 = smov [#allocation2]  }
   0x6   :  { %38 = dma.hbm_to_vmem [thread:$0]  %s31_s23, 1024, %s33_s25, [#allocation6], %s488_s29, %s488_s29, %s489_s30  }
   0x7   :  { %s22_s8 = sshll.u32 %s490_s7, 4  ;;  %s45_s11 = sshll.u32 %s553_s3, 4  ;;  %s23_s8 = int_to_ptr.vmem [resolvable:$true] %s22_s8  ;;  %s46_s11 = int_to_ptr.hbm [resolvable:$true] %s45_s11 }
   0x8   :  { %25 = dma.hbm_to_vmem [thread:$0]  %s21_s28, 64, %s23_s8, [#allocation3]  }
   0x9   :  { %s61_s13 = sshll.u32 %s555_s5, 4  ;;  %s491_s14 = smov [#allocation7]   ;;  %s62_s13 = int_to_ptr.hbm [resolvable:$true] %s61_s13 }
   0xa   :  { %s47_s15 = sshll.u32 %s491_s14, 4  ;;  %s492_s0 = smov [#allocation8]   ;;  %s48_s15 = int_to_ptr.vmem [resolvable:$true] %s47_s15 }
   0xb   :  { %53 = dma.hbm_to_vmem [thread:$0]  %s46_s11, 1024, %s48_s15, [#allocation6], %s488_s29, %s488_s29, %s489_s30  }
   0xc   :  { %s63_s16 = sshll.u32 %s492_s0, 4  ;;  %s64_s16 = int_to_ptr.vmem [resolvable:$true] %s63_s16 }
   0xd   :  { %66 = dma.hbm_to_vmem [thread:$0]  %s62_s13, 128, %s64_s16, [#allocation9]  }
   0xe   :  { %479 = dma.done.wait [#allocation3], 64  }
   0xf   :  { %480 = vsyncadd [#allocation3], 4294967232 }
  0x10   :  { %481 = dma.done.wait [#allocation6], 2048  }
  0x11   :  { %482 = vsyncadd [#allocation6], 4294965248 }
  0x12   :  { %483 = dma.done.wait [#allocation9], 128  }
  0x13   :  { %484 = vsyncadd [#allocation9], 4294967168  ;;  %v341_v0 = vld [vmem:[#allocation5 + $0x38] sm:$0xff]  ;;  %v340_v1 = vld [vmem:[#allocation5 + $0x30] sm:$0xff]  ;;  %s493_s19 = smov [#allocation10]   ;;  %s258_s23 = sshll.u32 %s556_s6, 4  ;;  %s259_s23 = int_to_ptr.hbm [resolvable:$true] %s258_s23 }
  0x14   :  { %152 = vmatpush.bf16.msra.mxu0 %v341_v0  ;;  %v349_v2 = vld [vmem:[#allocation7 + $0x38] sm:$0xff]  ;;  %v348_v3 = vld [vmem:[#allocation7 + $0x30] sm:$0xff]  ;;  %v339_v4 = vld [vmem:[#allocation5 + $0x28] sm:$0xff]  ;;  %s256_s20 = sshll.u32 %s493_s19, 4  ;;  %s257_s20 = int_to_ptr.vmem [resolvable:$true] %s256_s20 }
  0x15   :  { %235 = vmatpush.bf16.msra.mxu1 %v349_v2  ;;  %v347_v5 = vld [vmem:[#allocation7 + $0x28] sm:$0xff]  ;;  %v338_v6 = vld [vmem:[#allocation5 + $0x20] sm:$0xff]  ;;  %v337_v8 = vld [vmem:[#allocation5 + $0x18] sm:$0xff] }
  0x16   :  { %v346_v7 = vld [vmem:[#allocation7 + $0x20] sm:$0xff]  ;;  %v345_v9 = vld [vmem:[#allocation7 + $0x18] sm:$0xff]  ;;  %v336_v10 = vld [vmem:[#allocation5 + $0x10] sm:$0xff] }
  0x17   :  { %v344_v11 = vld [vmem:[#allocation7 + $0x10] sm:$0xff]  ;;  %v335_v12 = vld [vmem:[#allocation5 + $0x8] sm:$0xff]  ;;  %v334_v13 = vld [vmem:[#allocation5] sm:$0xff] }
  0x18   :  { %153 = vmatpush.bf16.msra.mxu0 %v340_v1  ;;  %v83_v14 = vld [vmem:[#allocation2] sm:$0xf]  ;;  %v343_v15 = vld [vmem:[#allocation7 + $0x8] sm:$0xff]  ;;  %v342_v16 = vld [vmem:[#allocation7] sm:$0xff] }
  0x19   :  { %236 = vmatpush.bf16.msra.mxu1 %v348_v3  ;;  %v357_v17 = vld [vmem:[%s552_s2] ss:$0 sm:$0xff]  ;;  %v248_v25 = vld [vmem:[#allocation8] sm:$0xff] }
  0x1a   :  { %v358_v23 = vld [vmem:[%s554_s4] ss:$0 sm:$0xff] }
  0x1c   :  { %154 = vmatpush.bf16.msra.mxu0 %v339_v4 }
  0x1d   :  { %237 = vmatpush.bf16.msra.mxu1 %v347_v5 }
  0x20   :  { %155 = vmatpush.bf16.msra.mxu0 %v338_v6 }
  0x21   :  { %238 = vmatpush.bf16.msra.mxu1 %v346_v7 }
  0x24   :  { %156 = vmatpush.bf16.msra.mxu0 %v337_v8 }
  0x25   :  { %239 = vmatpush.bf16.msra.mxu1 %v345_v9 }
  0x28   :  { %157 = vmatpush.bf16.msra.mxu0 %v336_v10 }
  0x29   :  { %240 = vmatpush.bf16.msra.mxu1 %v344_v11 }
  0x2c   :  { %158 = vmatpush.bf16.msra.mxu0 %v335_v12 }
  0x2d   :  { %241 = vmatpush.bf16.msra.mxu1 %v343_v15 }
  0x30   :  { %159 = vmatpush.bf16.msra.mxu0 %v334_v13 }
  0x31   :  { %242 = vmatpush.bf16.msra.mxu1 %v342_v16 }
  0x33   :  { %160 = vmatmul.bf16.vlgmr.msra.gmra.mxu0 %v83_v14 }
  0xb0   :  { %v161_v18 = vpop.f32.mrf.mxu0 }
  0xb1   :  { %v162_v19 = vadd.f32 %v357_v17, %v161_v18 }
  0xb3   :  { %v165_v20 = vmax.f32 %v162_v19, 0.0 }
  0xb5   :  { %v166_v21 = vpack.c.bf16 %v165_v20, %v165_v20 }
  0xb7   :  { %243 = vmatmul.bf16.vlgmr.msra.gmra.mxu1 %v166_v21 }
  0xb8   :  { %v163_v22 = vpop.f32.mrf.mxu0 }
 0x134   :  { %v244_v24 = vpop.f32.mrf.mxu1 }
 0x135   :  { %v245_v26 = vadd.f32 %v358_v23, %v244_v24 }
 0x137   :  { %v249_v27 = vadd.f32 %v248_v25, %v245_v26 }
 0x139   :  { %250 = vst [vmem:[#allocation10] sm:$0xff] %v249_v27 }
 0x13a   :  { %261 = dma.vmem_to_hbm [thread:$0]  %s257_s20, 128, %s259_s23, [#allocation4]  }
 0x13c   :  { %v246_v28 = vpop.f32.mrf.mxu1 }
 0x13d   :  { %485 = dma.done.wait [#allocation4], 128  }
 0x13e   :  { %486 = vsyncadd [#allocation4], 4294967168 }
 0x13f   :  { %266 = vsyncpa [#allocation3], 1 }
 0x140   :  { %267 = vsyncpa [#allocation6], 1 }
 0x141   :  { %268 = vsyncpa [#allocation9], 1 }
 0x142   :  { %269 = vsyncpa [#allocation4], 1 }

</bundles_post_ra>
